<compile_context>
chip_gen: v5e
topology: v5e:2x2
jax: 0.10.0
libtpu: 0.0.40
codegen_flags: <defaults>
</compile_context>

<pallas_src>
import functools

import jax
import jax.numpy as jnp
from jax.experimental import pallas as pl
from jax.experimental.pallas import tpu as pltpu


def _round_up(v, m):
    return ((v + m - 1) // m) * m


def _vq_kernel(x_ref, cb_ref, idx_ref, min_s, arg_s, *,
               chunk_k, codebook_size, mask_padding):
    """One (row-tile i, codebook-tile j) step.

    x_ref:   (tn, D)  latent rows for this row tile (resident across j)
    cb_ref:  (tk, D)  codebook block j (resident for the whole grid if k_tiles==1)
    idx_ref: (1, tn)  i32 argmin index per row (written on last j) — lane-dense
    min_s:   (1, tn)  f32 running min score   (VMEM scratch)
    arg_s:   (1, tn)  i32 running argmin       (VMEM scratch)
    """
    j = pl.program_id(1)
    tn = x_ref.shape[0]
    tk = cb_ref.shape[0]
    ck = chunk_k
    n_chunks = tk // ck
    n_groups = ck // 8

    @pl.when(j == 0)
    def _():
        min_s[...] = jnp.full_like(min_s, jnp.inf)
        arg_s[...] = jnp.zeros_like(arg_s)

    x = x_ref[...]                                               # (tn, D)
    iota8 = jax.lax.broadcasted_iota(jnp.int32, (8, tn), 0)      # small, reused

    run_min = min_s[...]
    run_arg = arg_s[...]

    for c in range(n_chunks):
        cb_c = cb_ref[c * ck:(c + 1) * ck, :]                    # (ck, D)
        # MXU: xc[k, n] = <x_n, c_k>  (k on sublanes, n on lanes)
        xc = jax.lax.dot_general(
            cb_c, x, (((1,), (1,)), ((), ())),
            preferred_element_type=jnp.float32)                  # (ck, tn)

        # score[k, n] = 0.5*||c_k||^2 - <x_n, c_k>   (argmin-equivalent)
        cb_f = cb_c.astype(jnp.float32)
        c2h = 0.5 * jnp.sum(cb_f * cb_f, axis=1, keepdims=True)  # (ck, 1)
        if mask_padding:
            # Padded codebook rows (zero-filled) must never win the argmin.
            row = (j * tk + c * ck
                   + jax.lax.broadcasted_iota(jnp.int32, (ck, 1), 0))
            c2h = jnp.where(row >= codebook_size, jnp.inf, c2h)
        score = c2h - xc                                         # (ck, tn)

        # Fused running (value, group-id) min over sublane groups:
        # one pass over the score tile, 1 cmp + 2 selects per element.
        val = score[0:8, :]                                      # (8, tn)
        gid = jnp.zeros((8, tn), jnp.int32)
        for g in range(1, n_groups):
            sg = score[g * 8:(g + 1) * 8, :]
            better = sg < val                                    # strict < keeps earliest
            val = jnp.where(better, sg, val)
            gid = jnp.where(better, g, gid)

        # Resolve within the (8, tn) carry to a chunk-local first-occurrence argmin.
        key = gid * 8 + iota8                                    # chunk-local index
        cmin = jnp.min(val, axis=0, keepdims=True)               # (1, tn)
        carg = jnp.min(jnp.where(val == cmin, key, ck),
                       axis=0, keepdims=True)                    # (1, tn)
        carg = carg + (j * tk + c * ck)                          # global codebook index

        better = cmin < run_min                                  # earlier block wins ties
        run_min = jnp.where(better, cmin, run_min)
        run_arg = jnp.where(better, carg, run_arg)

    min_s[...] = run_min
    arg_s[...] = run_arg

    @pl.when(j == pl.num_programs(1) - 1)
    def _():
        idx_ref[...] = run_arg                                   # lane-dense (1, tn) store


@functools.partial(
    jax.jit,
    static_argnames=("tile_n", "tile_k", "chunk_k", "resident_bytes",
                     "use_bf16_matmul"))
def vector_quantize(latents, codebook, *, tile_n=2048, tile_k=512, chunk_k=256,
                    resident_bytes=8 * 1024 * 1024, use_bf16_matmul=False):
    """Pallas-backed VectorQuantizer.forward.

    latents:  [B, C, F, D] float32
    codebook: [K, D]       float32
    returns:  [B, C, F]    int32 indices into the codebook
    """
    assert tile_n % 128 == 0 and chunk_k % 8 == 0 and tile_k >= 8
    B, C, F, D = latents.shape
    K, Dc = codebook.shape
    assert Dc == D
    N = B * C * F

    compute_dtype = jnp.bfloat16 if use_bf16_matmul else jnp.float32
    # TODO(synk): bf16 matmul inputs can flip the argmin for near-tied
    # codewords; it is opt-in (helps v5e most), f32 is the exact default.
    x = latents.reshape(N, D).astype(compute_dtype)
    cb = codebook.astype(compute_dtype)
    itemsize = jnp.dtype(compute_dtype).itemsize

    # --- Row (lane) tiling: tn multiple of 128 => lane-dense unmasked output
    # stores.  No jnp.pad of x: the partial last block is handled by Pallas and
    # the garbage rows' indices are sliced off below.
    tn = min(tile_n, _round_up(N, 128))
    n_tiles = pl.cdiv(N, tn)
    if n_tiles < 2 and N > 128:
        # Give both v7x TensorCores work on the "parallel" axis.
        tn = _round_up(pl.cdiv(N, 2), 128)
        n_tiles = pl.cdiv(N, tn)

    # --- Codebook (sublane) tiling.  If the whole codebook fits the VMEM
    # budget (double-buffer accounted), make it resident: k_tiles == 1 with a
    # constant block index => DMA'd from HBM exactly once for the whole grid.
    K8 = _round_up(K, 8)
    ck = _round_up(min(chunk_k, K8), 8)          # in-kernel MXU/reduce chunk
    resident_tk = _round_up(K, ck)
    if 2 * resident_tk * D * itemsize <= resident_bytes:
        tk = resident_tk
    else:
        tk = _round_up(min(tile_k, K8), ck)
    K_pad = _round_up(K, tk)
    k_tiles = K_pad // tk
    if K_pad != K:
        cb = jnp.pad(cb, ((0, K_pad - K), (0, 0)))   # codebook is small; cheap

    kernel = functools.partial(
        _vq_kernel, chunk_k=ck, codebook_size=K, mask_padding=(K_pad != K))

    # Rough VMEM footprint -> explicit limit (stay under v7x's 64 MiB part).
    est = (2 * tn * D * itemsize            # x blocks (double-buffered)
           + 2 * tk * D * itemsize          # codebook blocks
           + 2 * ck * tn * 4                # score / xc transients
           + 8 * 8 * tn * 4)                # out / scratch / (8, tn) temps
    vmem_limit = int(min(48 * 1024 * 1024, max(32 * 1024 * 1024, 2 * est)))

    out = pl.pallas_call(
        kernel,
        out_shape=jax.ShapeDtypeStruct((n_tiles, 1, tn), jnp.int32),
        grid=(n_tiles, k_tiles),                       # reduction axis (K) last
        in_specs=[
            pl.BlockSpec((tn, D), lambda i, j: (i, 0)),   # latent rows (resident over j)
            pl.BlockSpec((tk, D), lambda i, j: (j, 0)),   # codebook (resident if k_tiles==1)
        ],
        out_specs=pl.BlockSpec((None, 1, tn), lambda i, j: (i, 0, 0)),
        scratch_shapes=[
            pltpu.VMEM((1, tn), jnp.float32),             # running min score
            pltpu.VMEM((1, tn), jnp.int32),               # running argmin
        ],
        compiler_params=pltpu.CompilerParams(
            dimension_semantics=("parallel", "arbitrary"),
            vmem_limit_bytes=vmem_limit,
        ),
    )(x, cb)

    return out.reshape(n_tiles * tn)[:N].reshape(B, C, F)


def init_codebook(key, codebook_size, latent_dim):
    """Deterministic xavier_uniform_ init (gain=1), same as nn.init.xavier_uniform_."""
    bound = jnp.sqrt(6.0 / (codebook_size + latent_dim))
    return jax.random.uniform(
        key, (codebook_size, latent_dim), jnp.float32, minval=-bound, maxval=bound
    )


if __name__ == "__main__":
    key = jax.random.PRNGKey(0)
    k_lat, k_cb = jax.random.split(key)

    # Small shapes implied by the forward: [batch, channels, num_frames, latent_dim]
    B, C, F, D = 2, 4, 8, 32
    codebook_size = 16

    latents = jax.random.normal(k_lat, (B, C, F, D), jnp.float32)
    codebook = init_codebook(k_cb, codebook_size, D)

    indices = vector_quantize(latents, codebook)
    jax.block_until_ready(indices)

    assert indices.shape == (B, C, F)
    assert indices.dtype == jnp.int32
    assert bool(jnp.all((indices >= 0) & (indices < codebook_size)))

    # Reference check in plain JAX using the exact PyTorch expression.
    xf = latents.reshape(-1, D)
    dist_ref = (
        jnp.sum(xf**2, axis=1, keepdims=True)
        - 2.0 * xf @ codebook.T
        + jnp.sum(codebook**2, axis=1)
    )
    ref = jnp.argmin(dist_ref, axis=-1).astype(jnp.int32)
    got = indices.reshape(-1)
    if not bool(jnp.array_equal(got, ref)):
        # Tolerate distance-equal ties (argmin is invariant under the affine
        # transform used in the kernel, but f32 rounding can break exact ties).
        d_got = jnp.take_along_axis(dist_ref, got[:, None], axis=1)[:, 0]
        d_ref = jnp.min(dist_ref, axis=1)
        assert bool(jnp.allclose(d_got, d_ref, rtol=1e-5, atol=1e-5)), \
            "kernel indices do not minimize the distance"

    print("KERNEL_OK")
</pallas_src>

<mosaic_0001>
module attributes {stable_mosaic.version = 11 : i64} {
  func.func @_vq_kernel(%arg0: i32, %arg1: i32, %arg2: memref<128x32xf32, #tpu.memory_space<vmem>>, %arg3: memref<16x32xf32, #tpu.memory_space<vmem>>, %arg4: memref<1x1x128xi32, #tpu.memory_space<vmem>>, %arg5: memref<1x128xf32, #tpu.memory_space<vmem>>, %arg6: memref<1x128xi32, #tpu.memory_space<vmem>>) attributes {dimension_semantics = [#tpu.dimension_semantics<parallel>, #tpu.dimension_semantics<arbitrary>], iteration_bounds = array<i64: 1, 1>, scalar_prefetch = 0 : i64, scratch_operands = 2 : i64, tpu.core_type = #tpu.core_type<tc>, window_params = [{transform_indices = @transform_0, window_bounds = array<i64: 128, 32>}, {transform_indices = @transform_1, window_bounds = array<i64: 16, 32>}, {transform_indices = @transform_2, window_bounds = array<i64: 1, 1, 128>}]} {
    %c0_i32 = arith.constant 0 : i32
    %0 = arith.cmpi eq, %arg1, %c0_i32 : i32
    %1 = arith.extui %0 : i1 to i32
    %c0_i32_0 = arith.constant 0 : i32
    %2 = arith.cmpi ne, %1, %c0_i32_0 : i32
    scf.if %2 {
      %cst_21 = arith.constant 0x7F800000 : f32
      %46 = vector.broadcast %cst_21 : f32 to vector<1x128xf32>
      %c0_22 = arith.constant 0 : index
      %c0_23 = arith.constant 0 : index
      %47 = vector.load %arg5[%c0_22, %c0_23] : memref<1x128xf32, #tpu.memory_space<vmem>>, vector<1x128xf32>
      tpu.vector_store %arg5[%c0_22, %c0_23], %46 {strides = array<i32>} : memref<1x128xf32, #tpu.memory_space<vmem>>, vector<1x128xf32>,
      %c0_i32_24 = arith.constant 0 : i32
      %48 = vector.broadcast %c0_i32_24 : i32 to vector<1x128xi32>
      %c0_25 = arith.constant 0 : index
      %c0_26 = arith.constant 0 : index
      %49 = vector.load %arg6[%c0_25, %c0_26] : memref<1x128xi32, #tpu.memory_space<vmem>>, vector<1x128xi32>
      tpu.vector_store %arg6[%c0_25, %c0_26], %48 {strides = array<i32>} : memref<1x128xi32, #tpu.memory_space<vmem>>, vector<1x128xi32>,
    } else {
    }
    %c0 = arith.constant 0 : index
    %c0_1 = arith.constant 0 : index
    %3 = vector.load %arg2[%c0, %c0_1] : memref<128x32xf32, #tpu.memory_space<vmem>>, vector<128x32xf32>
    %4 = tpu.iota {dimensions = array<i32: 0>} : vector<8x128xi32>
    %c0_2 = arith.constant 0 : index
    %c0_3 = arith.constant 0 : index
    %5 = vector.load %arg5[%c0_2, %c0_3] : memref<1x128xf32, #tpu.memory_space<vmem>>, vector<1x128xf32>
    %c0_4 = arith.constant 0 : index
    %c0_5 = arith.constant 0 : index
    %6 = vector.load %arg6[%c0_4, %c0_5] : memref<1x128xi32, #tpu.memory_space<vmem>>, vector<1x128xi32>
    %c0_6 = arith.constant 0 : index
    %c0_7 = arith.constant 0 : index
    %7 = vector.load %arg3[%c0_6, %c0_7] : memref<16x32xf32, #tpu.memory_space<vmem>>, vector<16x32xf32>
    %cst = arith.constant dense<0.000000e+00> : vector<16x128xf32>
    %8 = tpu.matmul %7, %3, %cst {dimension_numbers = #tpu.dot_dimension_numbers<[1], [1], [0], [0], [0, 0, 1, 0], [], []>} : vector<16x32xf32>, vector<128x32xf32>, vector<16x128xf32> -> vector<16x128xf32>
    %9 = arith.mulf %7, %7 : vector<16x32xf32>
    %cst_8 = arith.constant dense<0.000000e+00> : vector<16xf32>
    %10 = vector.multi_reduction <add>, %9, %cst_8 [1] : vector<16x32xf32> to vector<16xf32>
    %11 = vector.shape_cast %10 : vector<16xf32> to vector<16x1xf32>
    %cst_9 = arith.constant 5.000000e-01 : f32
    %12 = vector.broadcast %cst_9 : f32 to vector<16x1xf32>
    %13 = arith.mulf %12, %11 : vector<16x1xf32>
    %14 = vector.broadcast %13 : vector<16x1xf32> to vector<16x128xf32>
    %15 = arith.subf %14, %8 : vector<16x128xf32>
    %16 = vector.extract_strided_slice %15 {offsets = [0, 0], sizes = [8, 128], strides = [1, 1]} : vector<16x128xf32> to vector<8x128xf32>
    %c0_i32_10 = arith.constant 0 : i32
    %17 = vector.broadcast %c0_i32_10 : i32 to vector<8x128xi32>
    %18 = vector.extract_strided_slice %15 {offsets = [8, 0], sizes = [8, 128], strides = [1, 1]} : vector<16x128xf32> to vector<8x128xf32>
    %19 = arith.cmpf olt, %18, %16 : vector<8x128xf32>
    %20 = arith.select %19, %18, %16 : vector<8x128xi1>, vector<8x128xf32>
    %c1_i32 = arith.constant 1 : i32
    %21 = vector.broadcast %c1_i32 : i32 to vector<8x128xi32>
    %22 = arith.select %19, %21, %17 : vector<8x128xi1>, vector<8x128xi32>
    %c8_i32 = arith.constant 8 : i32
    %23 = vector.broadcast %c8_i32 : i32 to vector<8x128xi32>
    %24 = arith.muli %22, %23 : vector<8x128xi32>
    %25 = arith.addi %24, %4 : vector<8x128xi32>
    %cst_11 = arith.constant dense<0x7F800000> : vector<128xf32>
    %26 = vector.multi_reduction <minimumf>, %20, %cst_11 [0] : vector<8x128xf32> to vector<128xf32>
    %27 = vector.shape_cast %26 : vector<128xf32> to vector<1x128xf32>
    %28 = vector.broadcast %27 : vector<1x128xf32> to vector<8x128xf32>
    %29 = arith.cmpf oeq, %20, %28 : vector<8x128xf32>
    %c16_i32 = arith.constant 16 : i32
    %30 = vector.broadcast %c16_i32 : i32 to vector<8x128xi32>
    %31 = arith.select %29, %25, %30 : vector<8x128xi1>, vector<8x128xi32>
    %cst_12 = arith.constant dense<2147483647> : vector<128xi32>
    %32 = vector.multi_reduction <minsi>, %31, %cst_12 [0] : vector<8x128xi32> to vector<128xi32>
    %33 = vector.shape_cast %32 : vector<128xi32> to vector<1x128xi32>
    %c16_i32_13 = arith.constant 16 : i32
    %34 = arith.muli %arg1, %c16_i32_13 : i32
    %c0_i32_14 = arith.constant 0 : i32
    %35 = arith.addi %34, %c0_i32_14 : i32
    %36 = vector.broadcast %35 : i32 to vector<1x128xi32>
    %37 = arith.addi %33, %36 : vector<1x128xi32>
    %38 = arith.cmpf olt, %27, %5 : vector<1x128xf32>
    %39 = arith.select %38, %27, %5 : vector<1x128xi1>, vector<1x128xf32>
    %40 = arith.select %38, %37, %6 : vector<1x128xi1>, vector<1x128xi32>
    %c0_15 = arith.constant 0 : index
    %c0_16 = arith.constant 0 : index
    %41 = vector.load %arg5[%c0_15, %c0_16] : memref<1x128xf32, #tpu.memory_space<vmem>>, vector<1x128xf32>
    tpu.vector_store %arg5[%c0_15, %c0_16], %39 {strides = array<i32>} : memref<1x128xf32, #tpu.memory_space<vmem>>, vector<1x128xf32>,
    %c0_17 = arith.constant 0 : index
    %c0_18 = arith.constant 0 : index
    %42 = vector.load %arg6[%c0_17, %c0_18] : memref<1x128xi32, #tpu.memory_space<vmem>>, vector<1x128xi32>
    tpu.vector_store %arg6[%c0_17, %c0_18], %40 {strides = array<i32>} : memref<1x128xi32, #tpu.memory_space<vmem>>, vector<1x128xi32>,
    %c0_i32_19 = arith.constant 0 : i32
    %43 = arith.cmpi eq, %arg1, %c0_i32_19 : i32
    %44 = arith.extui %43 : i1 to i32
    %c0_i32_20 = arith.constant 0 : i32
    %45 = arith.cmpi ne, %44, %c0_i32_20 : i32
    scf.if %45 {
      %c0_21 = arith.constant 0 : index
      %c0_22 = arith.constant 0 : index
      %c0_23 = arith.constant 0 : index
      %46 = vector.load %arg4[%c0_21, %c0_22, %c0_23] : memref<1x1x128xi32, #tpu.memory_space<vmem>>, vector<1x1x128xi32>
      %47 = vector.shape_cast %46 : vector<1x1x128xi32> to vector<1x128xi32>
      %48 = vector.shape_cast %40 : vector<1x128xi32> to vector<1x1x128xi32>
      tpu.vector_store %arg4[%c0_21, %c0_22, %c0_23], %48 {strides = array<i32>} : memref<1x1x128xi32, #tpu.memory_space<vmem>>, vector<1x1x128xi32>,
    } else {
    }
    return
  }
  func.func @transform_0(%arg0: i32, %arg1: i32) -> (i32, i32) {
    %c0_i32 = arith.constant 0 : i32
    %c0_i32_0 = arith.constant 0 : i32
    return %arg0, %c0_i32 : i32, i32
  }
  func.func @transform_1(%arg0: i32, %arg1: i32) -> (i32, i32) {
    %c0_i32 = arith.constant 0 : i32
    %c0_i32_0 = arith.constant 0 : i32
    return %arg1, %c0_i32 : i32, i32
  }
  func.func @transform_2(%arg0: i32, %arg1: i32) -> (i32, i32, i32) {
    %c0_i32 = arith.constant 0 : i32
    %c0_i32_0 = arith.constant 0 : i32
    %c0_i32_1 = arith.constant 0 : i32
    return %arg0, %c0_i32, %c0_i32_0 : i32, i32, i32
  }
}

</mosaic_0001>

<bundles_post_ra>
// kernel: vector_quantize.1
= control target key start
LH: loop header
LB: loop body
LE: loop exit
PB: predicated region body
PF: predicated region fallthrough
CT: control target
= control target key end

     0   :  { %7 = vsyncpa [#allocation5], 0  ;;  %s359_s0 = inlined_call_operand.hbm [shape: f32[64,32], index: 0, kind: input, shape index: {}]   ;;  %s360_s1 = inlined_call_operand.hbm [shape: f32[16,32], index: 1, kind: input, shape index: {}]   ;;  %s361_s2 = inlined_call_operand.vmem [shape: s32[1,1,128], index: 2, kind: output, shape index: {}]  }
   0x1   :  { %8 = vsyncpa [#allocation7], 0 }
   0x2   :  { %12 = vsyncadd [#allocation5], 1024  ;;  %s13_s11 = sshll.u32 %s359_s0, 4  ;;  %s293_s12 = smov [#allocation4]   ;;  %s14_s11 = int_to_ptr.hbm [resolvable:$true] %s13_s11 }
   0x3   :  { %s15_s13 = sshll.u32 %s293_s12, 4  ;;  %s26_s16 = sshll.u32 %s360_s1, 4  ;;  %s16_s13 = int_to_ptr.vmem [resolvable:$true] %s15_s13  ;;  %s27_s16 = int_to_ptr.hbm [resolvable:$true] %s26_s16 }
   0x4   :  { %s294_s17 = smov 128   ;;  %s295_s18 = smov 8  }
   0x5   :  { %21 = dma.hbm_to_vmem [thread:$0]  %s14_s11, 1024, %s16_s13, [#allocation5], %s294_s17, %s294_s17, %s295_s18  }
   0x6   :  { %s296_s19 = smov [#allocation6]  }
   0x7   :  { %s28_s20 = sshll.u32 %s296_s19, 4  ;;  %s29_s20 = int_to_ptr.vmem [resolvable:$true] %s28_s20 }
   0x8   :  { %34 = dma.hbm_to_vmem [thread:$0]  %s27_s16, 256, %s29_s20, [#allocation7], %s294_s17, %s294_s17, %s295_s18  }
   0x9   :  { %289 = dma.done.wait [#allocation5], 2048  }
   0xa   :  { %290 = vsyncadd [#allocation5], 4294965248 }
   0xb   :  { %291 = dma.done.wait [#allocation7], 256  }
   0xc   :  { %292 = vsyncadd [#allocation7], 4294967040  ;;  %vm71_vm0 = vcmask 261120   ;;  %v64_v0 = vld [vmem:[#allocation4 + $0x78] sm:$0xff]  ;;  %v63_v1 = vld [vmem:[#allocation4 + $0x70] sm:$0xff]  ;;  %v297_v22 = vmov inf   ;;  %v65_v35 = vlaneseq }
   0xd   :  { %201 = vmatpush.xpose.msk.msra.mxu0 %vm71_vm0, %v64_v0  ;;  %219 = vmatpush.xpose.msk.msra.mxu1 %vm71_vm0, %v64_v0  ;;  %v62_v2 = vld [vmem:[#allocation4 + $0x68] sm:$0xff]  ;;  %v61_v3 = vld [vmem:[#allocation4 + $0x60] sm:$0xff]  ;;  %v60_v4 = vld [vmem:[#allocation4 + $0x58] sm:$0xff]  ;;  %47 = vst [vmem:[#allocation2] sm:$0x1] %v297_v22  ;;  %v298_v23 = vmov 0  }
   0xe   :  { %v59_v5 = vld [vmem:[#allocation4 + $0x50] sm:$0xff]  ;;  %v58_v6 = vld [vmem:[#allocation4 + $0x48] sm:$0xff]  ;;  %v57_v7 = vld [vmem:[#allocation4 + $0x40] sm:$0xff]  ;;  %48 = vst [vmem:[#allocation3] sm:$0x1] %v298_v23  ;;  %v66_v39 = vshrl.u32 %v65_v35, 7 }
   0xf   :  { %v69_v8 = vld [vmem:[#allocation6] sm:$0xff]  ;;  %v56_v10 = vld [vmem:[#allocation4 + $0x38] sm:$0xff]  ;;  %v70_v12 = vld [vmem:[#allocation6 + $0x8] sm:$0xff] }
  0x10   :  { %v149_v9 = vmul.f32 %v69_v8, %v69_v8  ;;  %v150_v13 = vmul.f32 %v70_v12, %v70_v12  ;;  %v55_v14 = vld [vmem:[#allocation4 + $0x30] sm:$0xff]  ;;  %v54_v16 = vld [vmem:[#allocation4 + $0x28] sm:$0xff]  ;;  %v53_v17 = vld [vmem:[#allocation4 + $0x20] sm:$0xff] }
  0x11   :  { %202 = vmatpush.xpose.msk.msra.mxu0 %vm71_vm0, %v63_v1  ;;  %220 = vmatpush.xpose.msk.msra.mxu1 %vm71_vm0, %v63_v1  ;;  %v52_v18 = vld [vmem:[#allocation4 + $0x18] sm:$0xff]  ;;  %v51_v19 = vld [vmem:[#allocation4 + $0x10] sm:$0xff]  ;;  %v50_v20 = vld [vmem:[#allocation4 + $0x8] sm:$0xff] }
  0x12   :  { %v151_v11 = vsel %vm71_vm0, %v149_v9, 0.0  ;;  %v154_v15 = vsel %vm71_vm0, %v150_v13, 0.0  ;;  %v49_v21 = vld [vmem:[#allocation4] sm:$0xff] }
  0x13   :  { %152 = vadd.xlane.f32.xlu0 %v151_v11 }
  0x14   :  { %v67_v42 = vld [vmem:[#allocation2] sm:$0x1] }
  0x15   :  { %203 = vmatpush.xpose.msk.msra.mxu0 %vm71_vm0, %v62_v2  ;;  %221 = vmatpush.xpose.msk.msra.mxu1 %vm71_vm0, %v62_v2  ;;  %v68_v52 = vld [vmem:[#allocation3] sm:$0x1] }
  0x19   :  { %204 = vmatpush.xpose.msk.msra.mxu0 %vm71_vm0, %v61_v3  ;;  %222 = vmatpush.xpose.msk.msra.mxu1 %vm71_vm0, %v61_v3 }
  0x1b   :  { %155 = vadd.xlane.f32.xlu0 %v154_v15 }
  0x1d   :  { %205 = vmatpush.xpose.msk.msra.mxu0 %vm71_vm0, %v60_v4  ;;  %223 = vmatpush.xpose.msk.msra.mxu1 %vm71_vm0, %v60_v4 }
  0x21   :  { %206 = vmatpush.xpose.msk.msra.mxu0 %vm71_vm0, %v59_v5  ;;  %224 = vmatpush.xpose.msk.msra.mxu1 %vm71_vm0, %v59_v5 }
  0x25   :  { %207 = vmatpush.xpose.msk.msra.mxu0 %vm71_vm0, %v58_v6  ;;  %225 = vmatpush.xpose.msk.msra.mxu1 %vm71_vm0, %v58_v6 }
  0x29   :  { %208 = vmatpush.xpose.msk.msra.mxu0 %vm71_vm0, %v57_v7  ;;  %226 = vmatpush.xpose.msk.msra.mxu1 %vm71_vm0, %v57_v7 }
  0x2d   :  { %209 = vmatpush.xpose.msk.msra.mxu0 %vm71_vm0, %v56_v10  ;;  %227 = vmatpush.xpose.msk.msra.mxu1 %vm71_vm0, %v56_v10 }
  0x31   :  { %210 = vmatpush.xpose.msk.msra.mxu0 %vm71_vm0, %v55_v14  ;;  %228 = vmatpush.xpose.msk.msra.mxu1 %vm71_vm0, %v55_v14 }
  0x35   :  { %211 = vmatpush.xpose.msk.msra.mxu0 %vm71_vm0, %v54_v16  ;;  %229 = vmatpush.xpose.msk.msra.mxu1 %vm71_vm0, %v54_v16 }
  0x39   :  { %212 = vmatpush.xpose.msk.msra.mxu0 %vm71_vm0, %v53_v17  ;;  %230 = vmatpush.xpose.msk.msra.mxu1 %vm71_vm0, %v53_v17 }
  0x3d   :  { %213 = vmatpush.xpose.msk.msra.mxu0 %vm71_vm0, %v52_v18  ;;  %231 = vmatpush.xpose.msk.msra.mxu1 %vm71_vm0, %v52_v18 }
  0x41   :  { %214 = vmatpush.xpose.msk.msra.mxu0 %vm71_vm0, %v51_v19  ;;  %232 = vmatpush.xpose.msk.msra.mxu1 %vm71_vm0, %v51_v19 }
  0x45   :  { %215 = vmatpush.xpose.msk.msra.mxu0 %vm71_vm0, %v50_v20  ;;  %233 = vmatpush.xpose.msk.msra.mxu1 %vm71_vm0, %v50_v20 }
  0x49   :  { %216 = vmatpush.xpose.msk.msra.mxu0 %vm71_vm0, %v49_v21  ;;  %234 = vmatpush.xpose.msk.msra.mxu1 %vm71_vm0, %v49_v21 }
  0x4c   :  { %217 = vmatmul.msk.f32.vlgmr.msra.gmra.mxu0 %vm71_vm0, %v69_v8  ;;  %218 = vmatmul.msk.f32.vlgmr.msra.gmra.mxu1 %vm71_vm0, %v70_v12 }
  0x86   :  { %v153_v24 = vpop.xlane.xlu0 %152 }
  0x87   :  { %v157_v27 = vmul.f32 0.5, %v153_v24 }
  0x8e   :  { %v156_v25 = vpop.xlane.xlu0 %155 }
  0x8f   :  { %v158_v26 = vmul.f32 0.5, %v156_v25 }
  0xc9   :  { %v143_v28 = vpop.f32.mrf.mxu0  ;;  %v146_v29 = vpop.f32.mrf.mxu1 }
  0xca   :  { %v159_v30 = vsub.f32 %v157_v27, %v143_v28  ;;  %v160_v31 = vsub.f32 %v158_v26, %v146_v29 }
  0xcc   :  { %vm161_vm1 = vcmp.lt.f32.partialorder %v160_v31, %v159_v30 }
  0xcd   :  { %v162_v32 = vsel %vm161_vm1, %v160_v31, %v159_v30  ;;  %v163_v36 = vsel %vm161_vm1, 1, %v298_v23 }
  0xce   :  { %v166_v33 = vrot.slane %v162_v32, 4  ;;  %v164_v40 = vmul.u32 8, %v163_v36 }
  0xd0   :  { %v167_v34 = vmin.f32 %v162_v32, %v166_v33  ;;  %v165_v44 = vadd.s32 %v164_v40, %v66_v39 }
  0xd2   :  { %v168_v37 = vrot.slane %v167_v34, 2 }
  0xd4   :  { %v169_v38 = vmin.f32 %v167_v34, %v168_v37 }
  0xd6   :  { %v170_v41 = vrot.slane %v169_v38, 1 }
  0xd8   :  { %v171_v43 = vmin.f32 %v169_v38, %v170_v41 }
  0xda   :  { %vm172_vm2 = vcmp.eq.f32.partialorder %v162_v32, %v171_v43  ;;  %vm186_vm3 = vcmp.lt.f32.partialorder %v171_v43, %v67_v42 }
  0xdb   :  { %v173_v45 = vsel %vm172_vm2, %v165_v44, 16  ;;  %v187_v46 = vsel %vm186_vm3, %v171_v43, %v67_v42 }
  0xdc   :  { %v174_v47 = vrot.slane %v173_v45, 4  ;;  %189 = vst [vmem:[#allocation2] sm:$0x1] %v187_v46 }
  0xde   :  { %vm175_vm4 = vcmp.lt.s32.totalorder %v173_v45, %v174_v47 }
  0xdf   :  { %v176_v48 = vsel %vm175_vm4, %v173_v45, %v174_v47 }
  0xe0   :  { %v177_v49 = vrot.slane %v176_v48, 2 }
  0xe2   :  { %vm178_vm5 = vcmp.lt.s32.totalorder %v176_v48, %v177_v49 }
  0xe3   :  { %v179_v50 = vsel %vm178_vm5, %v176_v48, %v177_v49 }
  0xe4   :  { %v180_v51 = vrot.slane %v179_v50, 1 }
  0xe6   :  { %vm181_vm6 = vcmp.lt.s32.totalorder %v179_v50, %v180_v51 }
  0xe7   :  { %v182_v53 = vsel %vm181_vm6, %v179_v50, %v180_v51 }
  0xe8   :  { %v188_v54 = vsel %vm186_vm3, %v182_v53, %v68_v52 }
  0xe9   :  { %190 = vst [vmem:[#allocation3] sm:$0x1] %v188_v54 }
  0xea   :  { %194 = vst [vmem:[%s361_s2] sm:$0x1] %v188_v54 }
  0xeb   :  { %199 = vsyncpa [#allocation5], 1 }
  0xec   :  { %200 = vsyncpa [#allocation7], 1 }

</bundles_post_ra>
